<compile_context>
chip_gen: v6e
topology: v6e:2x2x1
jax: 0.10.0
libtpu: 0.0.40
codegen_flags: <defaults>
</compile_context>

<pallas_src>
import math

import jax
import jax.numpy as jnp
from jax.experimental import pallas as pl
from jax.experimental.pallas import tpu as pltpu


def sage_kernel(a_ref, x_ref, wl_ref, wr_ref, bl_ref, o_ref, acc_ref):
    """Grid = (row tiles, K tiles of the adjacency contraction)."""
    i = pl.program_id(0)
    k = pl.program_id(1)
    tm, tk = a_ref.shape

    @pl.when(k == 0)
    def _init():
        acc_ref[...] = jnp.zeros_like(acc_ref)

    # Accumulate (graph @ x) for this row tile in f32 (bf16 MXU operands).
    k_start = pl.multiple_of(k * tk, tk)
    xk = x_ref[pl.ds(k_start, tk), :]
    acc_ref[...] += jnp.dot(a_ref[...], xk, preferred_element_type=jnp.float32)

    @pl.when(k == pl.num_programs(1) - 1)
    def _finalize():
        # Root rows for lin_r, sliced from the resident x copy.
        i_start = pl.multiple_of(i * tm, tm)
        xi = x_ref[pl.ds(i_start, tm), :]

        agg = acc_ref[...].astype(jnp.bfloat16)            # aggregated neighbors
        out_l = jnp.dot(agg, wl_ref[...],
                        preferred_element_type=jnp.float32) + bl_ref[...]
        out_r = jnp.dot(xi, wr_ref[...],
                        preferred_element_type=jnp.float32)
        o_ref[...] = (out_l + out_r).astype(o_ref.dtype)


def sage_conv(x, graph, params, *, tm=128, tk=128):
    N, D = x.shape
    out_dim = params["w_l"].shape[1]

    tm = min(tm, N)
    tk = min(tk, N)
    assert N % tm == 0 and N % tk == 0, "node count must divide the row/K tiles"
    assert tm % 8 == 0 and tk % 8 == 0, "tiles must be sublane aligned"
    assert D % 128 == 0 and out_dim % 128 == 0, "feature dims must be lane-dense (x128)"

    # bf16 only for MXU operands; accumulation / bias / sum stay f32.
    a16 = graph.astype(jnp.bfloat16)
    x16 = x.astype(jnp.bfloat16)
    wl16 = params["w_l"].astype(jnp.bfloat16)
    wr16 = params["w_r"].astype(jnp.bfloat16)
    b_l = params["b_l"].astype(jnp.float32)

    grid = (N // tm, N // tk)

    flops = 2 * N * N * D + 4 * N * D * out_dim
    bytes_accessed = (N * N * 2            # adjacency (bf16), dominant stream
                      + N * D * 2          # x, loaded once (VMEM-resident)
                      + 2 * D * out_dim * 2
                      + out_dim * 4
                      + N * out_dim * 4)   # f32 output

    return pl.pallas_call(
        sage_kernel,
        out_shape=jax.ShapeDtypeStruct((N, out_dim), jnp.float32),
        grid_spec=pltpu.PrefetchScalarGridSpec(
            num_scalar_prefetch=0,
            grid=grid,
            in_specs=[
                pl.BlockSpec((tm, tk), lambda i, k: (i, k)),        # A tile
                pl.BlockSpec((N, D), lambda i, k: (0, 0)),          # x, resident
                pl.BlockSpec((D, out_dim), lambda i, k: (0, 0)),    # W_l
                pl.BlockSpec((D, out_dim), lambda i, k: (0, 0)),    # W_r
                pl.BlockSpec((1, out_dim), lambda i, k: (0, 0)),    # b_l
            ],
            out_specs=pl.BlockSpec((tm, out_dim), lambda i, k: (i, 0)),
            scratch_shapes=[pltpu.VMEM((tm, D), jnp.float32)],
        ),
        compiler_params=pltpu.CompilerParams(
            dimension_semantics=("parallel", "arbitrary"),
            vmem_limit_bytes=48 * 1024 * 1024,
        ),
        cost_estimate=pl.CostEstimate(
            flops=flops, transcendentals=0, bytes_accessed=bytes_accessed),
    )(a16, x16, wl16, wr16, b_l)


def init_params(key, in_dim, out_dim):
    """glorot(W_l), glorot(W_r), zeros(b_l) — matches SAGEConv.reset_parameters."""
    k1, k2 = jax.random.split(key)
    bound = math.sqrt(6.0 / (in_dim + out_dim))
    w_l = jax.random.uniform(k1, (in_dim, out_dim), jnp.float32, -bound, bound)
    w_r = jax.random.uniform(k2, (in_dim, out_dim), jnp.float32, -bound, bound)
    b_l = jnp.zeros((1, out_dim), jnp.float32)
    return {"w_l": w_l, "w_r": w_r, "b_l": b_l}


def sage_conv_ref(x, graph, params):
    """Pure-JAX reference with the same bf16 MXU casts as the kernel."""
    a16 = graph.astype(jnp.bfloat16)
    x16 = x.astype(jnp.bfloat16)
    wl16 = params["w_l"].astype(jnp.bfloat16)
    wr16 = params["w_r"].astype(jnp.bfloat16)
    agg = jnp.dot(a16, x16, preferred_element_type=jnp.float32).astype(jnp.bfloat16)
    out_l = jnp.dot(agg, wl16, preferred_element_type=jnp.float32) + params["b_l"]
    out_r = jnp.dot(x16, wr16, preferred_element_type=jnp.float32)
    return out_l + out_r


if __name__ == "__main__":
    # Small but lane-dense shapes: 256 nodes, 128-dim features in / out.
    # Grid is (2, 2) so the init / accumulate / finalize phases are all exercised.
    N, in_dim, out_dim = 256, 128, 128
    key = jax.random.PRNGKey(0)
    kx, kg, km, kp = jax.random.split(key, 4)

    x = jax.random.normal(kx, (N, in_dim), jnp.float32)
    # Deterministic sparse-ish weighted adjacency, materialized densely
    # (the torch sparse `graph @ x` as a dense matmul).
    mask = (jax.random.uniform(km, (N, N)) < 0.15).astype(jnp.float32)
    graph = mask * jax.random.uniform(kg, (N, N), jnp.float32, 0.1, 1.0)

    params = init_params(kp, in_dim, out_dim)

    out = sage_conv(x, graph, params)
    out = jax.block_until_ready(out)

    ref = sage_conv_ref(x, graph, params)
    assert out.shape == (N, out_dim)
    err = float(jnp.max(jnp.abs(out - ref)))
    assert jnp.allclose(out, ref, atol=1e-2, rtol=1e-2), err

    print("KERNEL_OK")
</pallas_src>

<mosaic_0001>
module attributes {stable_mosaic.version = 11 : i64} {
  func.func @sage_kernel(%arg0: i32, %arg1: i32, %arg2: memref<128x128xbf16, #tpu.memory_space<vmem>>, %arg3: memref<256x128xbf16, #tpu.memory_space<vmem>>, %arg4: memref<128x128xbf16, #tpu.memory_space<vmem>>, %arg5: memref<128x128xbf16, #tpu.memory_space<vmem>>, %arg6: memref<1x128xf32, #tpu.memory_space<vmem>>, %arg7: memref<128x128xf32, #tpu.memory_space<vmem>>, %arg8: memref<128x128xf32, #tpu.memory_space<vmem>>) attributes {dimension_semantics = [#tpu.dimension_semantics<parallel>, #tpu.dimension_semantics<arbitrary>], iteration_bounds = array<i64: 2, 2>, scalar_prefetch = 0 : i64, scratch_operands = 1 : i64, tpu.core_type = #tpu.core_type<tc>, window_params = [{transform_indices = @transform_0, window_bounds = array<i64: 128, 128>}, {pipeline_mode = #tpu.pipeline_mode<synchronous>, transform_indices = @transform_1, window_bounds = array<i64: 256, 128>}, {pipeline_mode = #tpu.pipeline_mode<synchronous>, transform_indices = @transform_2, window_bounds = array<i64: 128, 128>}, {pipeline_mode = #tpu.pipeline_mode<synchronous>, transform_indices = @transform_3, window_bounds = array<i64: 128, 128>}, {pipeline_mode = #tpu.pipeline_mode<synchronous>, transform_indices = @transform_4, window_bounds = array<i64: 1, 128>}, {transform_indices = @transform_5, window_bounds = array<i64: 128, 128>}]} {
    %c0_i32 = arith.constant 0 : i32
    %0 = arith.cmpi eq, %arg1, %c0_i32 : i32
    %1 = arith.extui %0 : i1 to i32
    %c0_i32_0 = arith.constant 0 : i32
    %2 = arith.cmpi ne, %1, %c0_i32_0 : i32
    scf.if %2 {
      %cst_8 = arith.constant 0.000000e+00 : f32
      %15 = vector.broadcast %cst_8 : f32 to vector<128x128xf32>
      %c0_9 = arith.constant 0 : index
      %c0_10 = arith.constant 0 : index
      %16 = vector.load %arg8[%c0_9, %c0_10] : memref<128x128xf32, #tpu.memory_space<vmem>>, vector<128x128xf32>
      tpu.vector_store %arg8[%c0_9, %c0_10], %15 {strides = array<i32>} : memref<128x128xf32, #tpu.memory_space<vmem>>, vector<128x128xf32>,
    } else {
    }
    %c128_i32 = arith.constant 128 : i32
    %3 = arith.muli %arg1, %c128_i32 : i32
    %4 = tpu.assume_multiple %3, 128 : i32
    %5 = arith.index_cast %4 : i32 to index
    %c0 = arith.constant 0 : index
    %6 = vector.load %arg3[%5, %c0] : memref<256x128xbf16, #tpu.memory_space<vmem>>, vector<128x128xbf16>
    %c0_1 = arith.constant 0 : index
    %c0_2 = arith.constant 0 : index
    %7 = vector.load %arg8[%c0_1, %c0_2] : memref<128x128xf32, #tpu.memory_space<vmem>>, vector<128x128xf32>
    %c0_3 = arith.constant 0 : index
    %c0_4 = arith.constant 0 : index
    %8 = vector.load %arg2[%c0_3, %c0_4] : memref<128x128xbf16, #tpu.memory_space<vmem>>, vector<128x128xbf16>
    %cst = arith.constant dense<0.000000e+00> : vector<128x128xf32>
    %9 = tpu.matmul %8, %6, %cst {dimension_numbers = #tpu.dot_dimension_numbers<[1], [0], [0], [1], [0, 0, 1, 1], [], []>} : vector<128x128xbf16>, vector<128x128xbf16>, vector<128x128xf32> -> vector<128x128xf32>
    %10 = arith.addf %7, %9 : vector<128x128xf32>
    %c0_5 = arith.constant 0 : index
    %c0_6 = arith.constant 0 : index
    %11 = vector.load %arg8[%c0_5, %c0_6] : memref<128x128xf32, #tpu.memory_space<vmem>>, vector<128x128xf32>
    tpu.vector_store %arg8[%c0_5, %c0_6], %10 {strides = array<i32>} : memref<128x128xf32, #tpu.memory_space<vmem>>, vector<128x128xf32>,
    %c1_i32 = arith.constant 1 : i32
    %12 = arith.cmpi eq, %arg1, %c1_i32 : i32
    %13 = arith.extui %12 : i1 to i32
    %c0_i32_7 = arith.constant 0 : i32
    %14 = arith.cmpi ne, %13, %c0_i32_7 : i32
    scf.if %14 {
      %c128_i32_8 = arith.constant 128 : i32
      %15 = arith.muli %arg0, %c128_i32_8 : i32
      %16 = tpu.assume_multiple %15, 128 : i32
      %17 = arith.index_cast %16 : i32 to index
      %c0_9 = arith.constant 0 : index
      %18 = vector.load %arg3[%17, %c0_9] : memref<256x128xbf16, #tpu.memory_space<vmem>>, vector<128x128xbf16>
      %c0_10 = arith.constant 0 : index
      %c0_11 = arith.constant 0 : index
      %19 = vector.load %arg8[%c0_10, %c0_11] : memref<128x128xf32, #tpu.memory_space<vmem>>, vector<128x128xf32>
      %20 = arith.truncf %19 : vector<128x128xf32> to vector<128x128xbf16>
      %c0_12 = arith.constant 0 : index
      %c0_13 = arith.constant 0 : index
      %21 = vector.load %arg4[%c0_12, %c0_13] : memref<128x128xbf16, #tpu.memory_space<vmem>>, vector<128x128xbf16>
      %cst_14 = arith.constant dense<0.000000e+00> : vector<128x128xf32>
      %22 = tpu.matmul %20, %21, %cst_14 {dimension_numbers = #tpu.dot_dimension_numbers<[1], [0], [0], [1], [0, 0, 1, 1], [], []>} : vector<128x128xbf16>, vector<128x128xbf16>, vector<128x128xf32> -> vector<128x128xf32>
      %c0_15 = arith.constant 0 : index
      %c0_16 = arith.constant 0 : index
      %23 = vector.load %arg6[%c0_15, %c0_16] : memref<1x128xf32, #tpu.memory_space<vmem>>, vector<1x128xf32>
      %24 = vector.broadcast %23 : vector<1x128xf32> to vector<128x128xf32>
      %25 = arith.addf %22, %24 : vector<128x128xf32>
      %c0_17 = arith.constant 0 : index
      %c0_18 = arith.constant 0 : index
      %26 = vector.load %arg5[%c0_17, %c0_18] : memref<128x128xbf16, #tpu.memory_space<vmem>>, vector<128x128xbf16>
      %cst_19 = arith.constant dense<0.000000e+00> : vector<128x128xf32>
      %27 = tpu.matmul %18, %26, %cst_19 {dimension_numbers = #tpu.dot_dimension_numbers<[1], [0], [0], [1], [0, 0, 1, 1], [], []>} : vector<128x128xbf16>, vector<128x128xbf16>, vector<128x128xf32> -> vector<128x128xf32>
      %28 = arith.addf %25, %27 : vector<128x128xf32>
      %c0_20 = arith.constant 0 : index
      %c0_21 = arith.constant 0 : index
      %29 = vector.load %arg7[%c0_20, %c0_21] : memref<128x128xf32, #tpu.memory_space<vmem>>, vector<128x128xf32>
      tpu.vector_store %arg7[%c0_20, %c0_21], %28 {strides = array<i32>} : memref<128x128xf32, #tpu.memory_space<vmem>>, vector<128x128xf32>,
    } else {
    }
    return
  }
  func.func @transform_0(%arg0: i32, %arg1: i32) -> (i32, i32) {
    %c0_i32 = arith.constant 0 : i32
    return %arg0, %arg1 : i32, i32
  }
  func.func @transform_1(%arg0: i32, %arg1: i32) -> (i32, i32) {
    %c0_i32 = arith.constant 0 : i32
    %c0_i32_0 = arith.constant 0 : i32
    %c0_i32_1 = arith.constant 0 : i32
    return %c0_i32, %c0_i32_0 : i32, i32
  }
  func.func @transform_2(%arg0: i32, %arg1: i32) -> (i32, i32) {
    %c0_i32 = arith.constant 0 : i32
    %c0_i32_0 = arith.constant 0 : i32
    %c0_i32_1 = arith.constant 0 : i32
    return %c0_i32, %c0_i32_0 : i32, i32
  }
  func.func @transform_3(%arg0: i32, %arg1: i32) -> (i32, i32) {
    %c0_i32 = arith.constant 0 : i32
    %c0_i32_0 = arith.constant 0 : i32
    %c0_i32_1 = arith.constant 0 : i32
    return %c0_i32, %c0_i32_0 : i32, i32
  }
  func.func @transform_4(%arg0: i32, %arg1: i32) -> (i32, i32) {
    %c0_i32 = arith.constant 0 : i32
    %c0_i32_0 = arith.constant 0 : i32
    %c0_i32_1 = arith.constant 0 : i32
    return %c0_i32, %c0_i32_0 : i32, i32
  }
  func.func @transform_5(%arg0: i32, %arg1: i32) -> (i32, i32) {
    %c0_i32 = arith.constant 0 : i32
    %c0_i32_0 = arith.constant 0 : i32
    return %arg0, %c0_i32 : i32, i32
  }
}

</mosaic_0001>

<bundles_post_ra>
// kernel: tpu_custom_call.1
= control target key start
LH: loop header
LB: loop body
LE: loop exit
PB: predicated region body
PF: predicated region fallthrough
CT: control target
= control target key end

     0   :  { %s2220_s0 = inlined_call_operand.hbm [shape: bf16[256,256], index: 0, kind: input, shape index: {}]   ;;  %s2221_s1 = inlined_call_operand.hbm [shape: bf16[256,128], index: 1, kind: input, shape index: {}]   ;;  %s2222_s2 = inlined_call_operand.hbm [shape: bf16[128,128], index: 2, kind: input, shape index: {}]   ;;  %s2223_s3 = inlined_call_operand.hbm [shape: bf16[128,128], index: 3, kind: input, shape index: {}]   ;;  %s2224_s4 = inlined_call_operand.vmem [shape: f32[1,128], index: 4, kind: input, shape index: {}]   ;;  %s2225_s5 = inlined_call_operand.hbm [shape: f32[256,128], index: 5, kind: output, shape index: {}]  }
   0x1   :  { %2240 = sst [smem:[#allocation22_spill]] %s2221_s1 }
   0x2   :  { %2241 = sst [smem:[#allocation23_spill]] %s2222_s2 }
   0x3   :  { %2242 = sst [smem:[#allocation24_spill]] %s2223_s3 }
   0x4   :  { %2243 = sst [smem:[#allocation25_spill]] %s2225_s5 }
   0x5   :  { %10 = vsyncpa [#allocation4], 0 }
   0x6   :  { %12 = vsyncpa [#allocation4 + $0x1], 0 }
   0x7   :  { %13 = vsyncpa [#allocation7], 0 }
   0x8   :  { %14 = vsyncpa [#allocation10], 0 }
   0x9   :  { %15 = vsyncpa [#allocation5], 0 }
   0xa   :  { %17 = vsyncpa [#allocation5 + $0x1], 0  ;;  %s1882_s18 = smov 0   ;;  %s1884_s19 = smov 0  }
   0xb   :  { %s1886_s20 = smov 0   ;;  %s1888_s21 = smov 0  }
   0xc   :  { %s1890_s22 = smov 0   ;;  %s1892_s23 = smov 0  }
   0xd   :  { %s1894_s24 = smov 0   ;;  %s1896_s25 = smov 0  }
   0xe   :  { %s1898_s26 = smov 0   ;;  %s1900_s27 = smov 0  }
   0xf   :  { %s1902_s28 = smov 0  }
  0x10 LB: > { %2244 = sst [smem:[#allocation16_spill]] %s1799_s18  ;;  %s1195_s29 = sadd.s32 4294967295, %s1839_s28   ;;  %s1839_s28 = sphi %s1902_s28, %s23_s28   ;;  %s1835_s27 = sphi %s1900_s27, %s2284_s27   ;;  %s1831_s26 = sphi %s1898_s26, %s2283_s26   ;;  %s1827_s25 = sphi %s1896_s25, %s2282_s25   ;;  %s1823_s24 = sphi %s1894_s24, %s2281_s24   ;;  %s1819_s23 = sphi %s1892_s23, %s2280_s23   ;;  %s1815_s22 = sphi %s1890_s22, %s2279_s22   ;;  %s1811_s21 = sphi %s1888_s21, %s2278_s21   ;;  %s1807_s20 = sphi %s1886_s20, %s2277_s20   ;;  %s1803_s19 = sphi %s1884_s19, %s2276_s19   ;;  %s1799_s18 = sphi %s1882_s18, %s2275_s18  }
  0x11   : > { %2245 = sst [smem:[#allocation17_spill]] %s1839_s28  ;;  %s1196_s30 = sadd.s32 4294967294, %s1839_s28  }
  0x12   : > { %p51_p0 = scmp.ne.s32.totalorder %s1819_s23, %s1815_s22  ;;  %p52_p1 = scmp.eq.s32.totalorder %s1839_s28, 0 }
  0x13   : > { %p57_p2 = scmp.ne.s32.totalorder %s1815_s22, %s1811_s21  ;;  %p1942_p3 = scmp.eq.s32.totalorder %s1195_s29, 0 }
  0x14   : > { %p1947_p4 = por %p52_p1, %p51_p0  ;;  %p164_p5 = scmp.ne.s32.totalorder %s1807_s20, %s1803_s19 }
  0x15   : > { %s2246_s7 = scalar_select %p1942_p3, 1, 0 }
  0x16   : > { %p1955_p6 = por %p1942_p3, %p57_p2  ;;  %p165_p7 = scmp.eq.s32.totalorder %s1195_s29, 3 }
  0x17   : > { %p170_p8 = scmp.ne.s32.totalorder %s1803_s19, %s1799_s18  ;;  %p171_p9 = scmp.eq.s32.totalorder %s1196_s30, 3 }
  0x18   : > { %p1961_p10 = por %p165_p7, %p164_p5  ;;  %p1197_p11 = scmp.ge.s32.totalorder %s1839_s28, 1 }
  0x19   : > { %p1966_p12 = por %p171_p9, %p170_p8  ;;  %p178_p13 = scmp.lt.s32.totalorder %s1839_s28, 5 }
  0x1a   : > { %s2249_s11 = scalar_select %p1961_p10, 1, 0 }
  0x1b   : > { %s2251_s12 = scalar_select %p1966_p12, 1, 0 }
  0x1c   : > { %2250 = sst [smem:[#allocation18_spill]] %s2249_s11  ;;  %p1971_p0 = pnand %p1197_p11, %p178_p13 }
  0x1d   : > { %2252 = sst [smem:[#allocation19_spill]] %s2251_s12  ;;  %s1841_s14 = smov [#allocation6]  }
  0x1e   : > { %s190_s15 = sshll.u32 %s1841_s14, 4  ;;  %p1442_p1 = pneg %p1971_p0  ;;  %s191_s15 = int_to_ptr.vmem [resolvable:$true] %s190_s15 }
  0x1f   : > { %p1463_p2 = scmp.lt.s32.totalorder %s1839_s28, 4  ;;  %s1842_s21 = smov [#allocation8]  }
  0x20   : > { %p1980_p5 = pnand %p1442_p1, %p1942_p3  ;;  %s203_s29 = sshll.u32 %s1842_s21, 4  ;;  %s204_s29 = int_to_ptr.vmem [resolvable:$true] %s203_s29 }
  0x21   : > { %p1986_p7 = pnand %p1463_p2, %p1947_p4  ;;  %s1616_s30 = scalar_lea.vmem %s191_s15, 2048 }
  0x22   : > { %p1607_p8 = pneg %p1980_p5  ;;  %p1617_p9 = scmp.ne.s32.totalorder %s191_s15, %s1616_s30 }
  0x23   : > { %p1624_p1 = scmp.lt.s32.totalorder %s191_s15, %s191_s15  ;;  %p1625_p12 = scmp.lt.s32.totalorder %s1616_s30, %s1616_s30 }
  0x24   : > { %p1619_p11 = pnand %p1617_p9, %p1607_p8 }
  0x25   : > { %p1626_p10 = por %p1625_p12, %p1624_p1 }
  0x26   : > { %p1620_p13 = pneg %p1619_p11 }
  0x28   : > { %p1627_p3 = pnand %p1626_p10, %p1620_p13 }
  0x2a   : > { %1630 = shalt.err (!%p1627_p3)
}
  0x2b   : > { %s2230_s9 = smov 64   ;;  %s2231_s14 = smov 4  }
  0x2c   : > { %s2256_s1 = sld [smem:[#allocation22_spill]]  ;;  %s1642_s8 = scalar_lea.vmem %s204_s29, 1024 }
  0x2d   : > { %p1643_p4 = scmp.ne.s32.totalorder %s204_s29, %s1642_s8  ;;  %p1650_p10 = scmp.lt.s32.totalorder %s204_s29, %s204_s29 }
  0x2e   : > { %p1651_p3 = scmp.lt.s32.totalorder %s1642_s8, %s1642_s8 }
  0x2f   : > { %p1645_p2 = pnand %p1643_p4, %p1607_p8 }
  0x30   : > { %p1652_p9 = por %p1651_p3, %p1650_p10 }
  0x31   : > { %p1646_p12 = pneg %p1645_p2 }
  0x32   : > { %1445 = dma.hbm_to_vmem [thread:$0]  (!%p1980_p5), %s2256_s1, 2048, %s191_s15, [#allocation7], %s2230_s9, %s2230_s9, %s2231_s14  }
  0x33   : > { %p1653_p11 = pnand %p1652_p9, %p1646_p12 }
  0x35   : > { %1656 = shalt.err (!%p1653_p11)
}
  0x36   : > { %s2257_s2 = sld [smem:[#allocation23_spill]]  ;;  %s1845_s6 = smov [#allocation9]  }
  0x37   : > { %s216_s15 = sshll.u32 %s1845_s6, 4  ;;  %s217_s15 = int_to_ptr.vmem [resolvable:$true] %s216_s15 }
  0x38   : > { %s1668_s21 = scalar_lea.vmem %s217_s15, 1024  ;;  %p1676_p2 = scmp.lt.s32.totalorder %s217_s15, %s217_s15 }
  0x39   : > { %p1669_p13 = scmp.ne.s32.totalorder %s217_s15, %s1668_s21  ;;  %p1677_p12 = scmp.lt.s32.totalorder %s1668_s21, %s1668_s21 }
  0x3b   : > { %p1671_p1 = pnand %p1669_p13, %p1607_p8  ;;  %p1678_p10 = por %p1677_p12, %p1676_p2 }
  0x3c   : > { %1448 = dma.hbm_to_vmem [thread:$0]  (!%p1980_p5), %s2257_s2, 1024, %s204_s29, [#allocation7], %s2230_s9, %s2230_s9, %s2231_s14  }
  0x3d   : > { %p1672_p4 = pneg %p1671_p1 }
  0x3f   : > { %p1679_p3 = pnand %p1678_p10, %p1672_p4 }
  0x41   : > { %1682 = shalt.err (!%p1679_p3)
}
  0x42   : > { %s2258_s3 = sld [smem:[#allocation24_spill]]  ;;  %s32_s29 = sadd.s32 1, %s1831_s26 }
  0x43   : > { %s35_s30 = sadd.s32 1, %s1835_s27  ;;  %p33_p8 = scmp.ge.s32.totalorder %s32_s29, 2 }
  0x44   : > { %s233_s6 = sand.u32 1, %s1819_s23   ;;  %s1264_s8 = sshll.u32 %s1835_s27, 5 }
  0x45   : > { %s1202_s16 = sshll.u32 %s233_s6, 6  ;;  %s2286_s29 = smov (%p33_p8, %s32_s29), 0 }
  0x46   : > { %2259 = sst [smem:[#allocation20_spill]] %s2286_s29  ;;  %s2288_s30 = smov (!%p33_p8, %s35_s30), %s1835_s27 }
  0x47   : > { %s40_s21 = ssub.s32 %s1831_s26, %s2286_s29  ;;  %p37_p9 = scmp.ge.s32.totalorder %s2288_s30, 2 }
  0x48   : > { %1451 = dma.hbm_to_vmem [thread:$0]  (!%p1980_p5), %s2258_s3, 1024, %s217_s15, [#allocation10], %s2230_s9, %s2230_s9, %s2231_s14  }
  0x49   : > { %s243_s12 = sadd.s32 %s1831_s26, %s1264_s8  ;;  %s237_s15 = scalar_lea.vmem [#allocation3], %s1202_s16 }
  0x4a   : > { %s246_s9 = sshll.u32 %s237_s15, 4  ;;  %s2290_s30 = smov (%p37_p9, %s2288_s30), 0  ;;  %s247_s9 = int_to_ptr.vmem [resolvable:$true] %s246_s9 }
  0x4b   : > { %2260 = sst [smem:[#allocation21_spill]] %s2290_s30  ;;  %s1205_s14 = sshll.u32 %s243_s12, 6 }
  0x4c   : > { %s39_s1 = ssub.s32 %s1835_s27, %s2290_s30  ;;  %s245_s18 = scalar_lea.hbm %s2220_s0, %s1205_s14 }
  0x4d   : > { %s41_s28 = sor.u32 %s40_s21, %s39_s1  ;;  %p152_p5 = scmp.eq.s32.totalorder %s39_s1, 0 }
  0x4e   : > { %p42_p11 = scmp.eq.s32.totalorder %s41_s28, 0  ;;  %s2261_s29 = sadd.s32 1, %s1807_s20 }
  0x4f   : > { %s2045_s5 = scalar_select %p152_p5, %s1807_s20, %s2261_s29  }
  0x50   : > { %s2262_s11 = sadd.s32 1, %s1819_s23  ;;  %s234_s16 = scalar_lea.sflag [#allocation4], %s233_s6 }
  0x51   : > { %s2050_s8 = scalar_select %p42_p11, %s1819_s23, %s2262_s11  }
  0x52   : > { %p1685_p13 = pneg %p1986_p7  ;;  %s1696_s15 = scalar_lea.vmem %s247_s9, 1024 }
  0x53   : > { %p1697_p1 = scmp.ne.s32.totalorder %s247_s9, %s1696_s15  ;;  %s1846_s12 = smov [#allocation3]  }
  0x54   : > { %s1701_s30 = sshll.u32 %s1846_s12, 4  ;;  %s1702_s30 = int_to_ptr.vmem [resolvable:$false] %s1701_s30 }
  0x55   : > { %p1699_p4 = pnand %p1697_p1, %p1685_p13  ;;  %s1703_s2 = scalar_lea.vmem %s1702_s30, 2048 }
  0x56   : > { %p1704_p12 = scmp.lt.s32.totalorder %s247_s9, %s1702_s30  ;;  %p1705_p10 = scmp.lt.s32.totalorder %s1703_s2, %s1696_s15 }
  0x57   : > { %p1700_p2 = pneg %p1699_p4 }
  0x58   : > { %p1706_p3 = por %p1705_p10, %p1704_p12 }
  0x5a   : > { %p1707_p8 = pnand %p1706_p3, %p1700_p2 }
  0x5c   : > { %1710 = shalt.err (!%p1707_p8)
}
  0x5d   : > { %s1847_s1 = smov 128   ;;  %s2263_s3 = smov 4  }
  0x5e   : > { %s2264_s28 = smov 64   ;;  %258 = sbr.rel (%p1971_p0) target bundleno = 656 (0x290), region = 40 }
  0x5f   : > { %1455 = dma.hbm_to_vmem [thread:$0]  (!%p1986_p7), %s245_s18, 1024, %s247_s9, %s234_s16, %s1847_s1, %s2264_s28, %s2263_s3  }
  0x60   : > { %s260_s11 = sand.u32 (!%p1971_p0), 1, %s1815_s22  }
  0x61   : > { %s1207_s14 = sshll.u32 (!%p1971_p0), %s260_s11, 6  ;;  %s261_s29 = scalar_lea.sflag (!%p1971_p0), [#allocation4], %s260_s11 }
  0x62   : > { %s2061_s6 = scalar_lea.vmem (!%p1971_p0), [#allocation3], %s1207_s14 }
  0x63   : > { %1782 = dma.done.wait (%p1955_p6), %s261_s29, 1024  }
  0x64   : > { %1784 = vsyncadd (%p1955_p6), %s261_s29, 4294966272  ;;  %p2265_p9 = scmp.ne.s32.totalorder %s2246_s7, 0 }
  0x66   : > { %1786 = dma.done.wait (%p2265_p9), [#allocation7], 3072  }
  0x67   : > { %1788 = vsyncadd (%p2265_p9), [#allocation7], 4294964224 }
  0x68   : > { %1790 = dma.done.wait (%p2265_p9), [#allocation10], 1024  }
  0x69   : > { %1792 = vsyncadd (%p2265_p9), [#allocation10], 4294966272  ;;  %s300_s18 = sand.u32 1, %s1803_s19   ;;  %p1212_p6 = scmp.ne.s32.totalorder %s1823_s24, 0 }
  0x6a   : > { %s1211_s13 = sshll.u32 %s300_s18, 7 }
  0x6b   : > { %s2078_s17 = scalar_lea.vmem [#allocation11], %s1211_s13  ;;  %309 = sbr.rel (%p1212_p6) target bundleno = 121 (0x79), region = 60 }
  0x70   : > { %v1848_v0 = vmov 0.0  }
  0x71   : > { %310 = vst [vmem:[#allocation2 + $0x30] sm:$0xff] %v1848_v0  ;;  %311 = vst [vmem:[#allocation2] sm:$0xff] %v1848_v0 }
  0x72   : > { %312 = vst [vmem:[#allocation2 + $0x58] sm:$0xff] %v1848_v0  ;;  %313 = vst [vmem:[#allocation2 + $0x18] sm:$0xff] %v1848_v0 }
  0x73   : > { %314 = vst [vmem:[#allocation2 + $0x50] sm:$0xff] %v1848_v0  ;;  %315 = vst [vmem:[#allocation2 + $0x68] sm:$0xff] %v1848_v0 }
  0x74   : > { %316 = vst [vmem:[#allocation2 + $0x8] sm:$0xff] %v1848_v0  ;;  %317 = vst [vmem:[#allocation2 + $0x48] sm:$0xff] %v1848_v0 }
  0x75   : > { %318 = vst [vmem:[#allocation2 + $0x40] sm:$0xff] %v1848_v0  ;;  %319 = vst [vmem:[#allocation2 + $0x20] sm:$0xff] %v1848_v0 }
  0x76   : > { %320 = vst [vmem:[#allocation2 + $0x10] sm:$0xff] %v1848_v0  ;;  %321 = vst [vmem:[#allocation2 + $0x38] sm:$0xff] %v1848_v0 }
  0x77   : > { %322 = vst [vmem:[#allocation2 + $0x60] sm:$0xff] %v1848_v0  ;;  %323 = vst [vmem:[#allocation2 + $0x70] sm:$0xff] %v1848_v0 }
  0x78   : > { %324 = vst [vmem:[#allocation2 + $0x78] sm:$0xff] %v1848_v0  ;;  %325 = vst [vmem:[#allocation2 + $0x28] sm:$0xff] %v1848_v0 }
  0x79 PF: > { %s1213_s7 = sshll.u32 %s1823_s24, 7  ;;  %v1573_v1 = vld [vmem:[%s2061_s6] sm:$0xff]   ;;  %v1575_v11 = vld [vmem:[%s2061_s6 + $0x8] sm:$0xff]   ;;  %v1577_v13 = vld [vmem:[%s2061_s6 + $0x10] sm:$0xff]   ;;  %p1231_p0 = scmp.ne.s32.totalorder %s1823_s24, 1 }
  0x7a   : > { %s327_s10 = sshra.s32 %s1213_s7, 3  ;;  %v1574_v2 = vld [vmem:[%s2061_s6 + $0x20] sm:$0xff]   ;;  %1330 = vmatprep.mubr.bf16.mxu0 %v1573_v1  ;;  %v1576_v12 = vld [vmem:[%s2061_s6 + $0x28] sm:$0xff]   ;;  %v1578_v14 = vld [vmem:[%s2061_s6 + $0x30] sm:$0xff]   ;;  %s1232_s21 = sshll.u32 (!%p1231_p0), %s1827_s25, 7 }
  0x7b   : > { %s1214_s9 = sshll.u32 %s327_s10, 2  ;;  %1338 = vmatprep.mubr.bf16.mxu1 %v1574_v2  ;;  %v1579_v15 = vld [vmem:[%s2061_s6 + $0x18] sm:$0xff]   ;;  %v347_v21 = vld [vmem:[#allocation2 + $0x30] sm:$0xff]  ;;  %v348_v33 = vld [vmem:[#allocation2] sm:$0xff]  ;;  %s609_s24 = sshra.s32 (!%p1231_p0), %s1232_s21, 3 }
  0x7c   : > { %s2084_s30 = scalar_lea.vmem [#allocation6], %s1214_s9  ;;  %v1580_v16 = vld [vmem:[%s2061_s6 + $0x38] sm:$0xff]   ;;  %v355_v22 = vld [vmem:[#allocation2 + $0x40] sm:$0xff]  ;;  %v353_v39 = vld [vmem:[#allocation2 + $0x8] sm:$0xff]  ;;  %s1233_s16 = sshll.u32 (!%p1231_p0), %s609_s24, 2 }
  0x7d   : > { %v1565_v3 = vld [vmem:[%s2084_s30 + $0x38] sm:$0xff]   ;;  %v1566_v4 = vld [vmem:[%s2084_s30 + $0x30] sm:$0xff]   ;;  %v1567_v5 = vld [vmem:[%s2084_s30 + $0x28] sm:$0xff]   ;;  %s2102_s15 = scalar_lea.vmem (!%p1231_p0), [#allocation6], %s1233_s16 }
  0x7e   : > { %1314 = vmatprep.subr.bf16.mxu0 %v1565_v3  ;;  %1410 = vmatprep.subr.bf16.mxu1 %v1565_v3  ;;  %v1568_v6 = vld [vmem:[%s2084_s30 + $0x20] sm:$0xff]   ;;  %v1569_v7 = vld [vmem:[%s2084_s30 + $0x18] sm:$0xff]   ;;  %v1570_v8 = vld [vmem:[%s2084_s30 + $0x10] sm:$0xff]  }
  0x7f   : > { %1315 = vmatpush3.bf16.msra.mxu0 %v1565_v3  ;;  %1418 = vmatpush3.bf16.msra.mxu1 %v1565_v3  ;;  %v1571_v9 = vld [vmem:[%s2084_s30 + $0x8] sm:$0xff]   ;;  %v1572_v10 = vld [vmem:[%s2084_s30] sm:$0xff]   ;;  %v349_v17 = vld [vmem:[#allocation2 + $0x58] sm:$0xff] }
  0x80   : > { %1316 = vmatprep.subr.bf16.mxu0 %v1566_v4  ;;  %1411 = vmatprep.subr.bf16.mxu1 %v1566_v4  ;;  %v357_v18 = vld [vmem:[#allocation2 + $0x10] sm:$0xff]  ;;  %v350_v27 = vld [vmem:[#allocation2 + $0x18] sm:$0xff]  ;;  %v356_v34 = vld [vmem:[#allocation2 + $0x20] sm:$0xff] }
  0x81   : > { %v358_v28 = vld [vmem:[#allocation2 + $0x38] sm:$0xff]  ;;  %v351_v45 = vld [vmem:[#allocation2 + $0x50] sm:$0xff]  ;;  %v359_v46 = vld [vmem:[#allocation2 + $0x60] sm:$0xff] }
  0x82   : > { %v361_v40 = vld [vmem:[#allocation2 + $0x78] sm:$0xff]  ;;  %v354_v51 = vld [vmem:[#allocation2 + $0x48] sm:$0xff]  ;;  %v360_v58 = vld [vmem:[#allocation2 + $0x70] sm:$0xff] }
  0x83   : > { %1317 = vmatpush3.bf16.msra.mxu0 %v1566_v4  ;;  %1419 = vmatpush3.bf16.msra.mxu1 %v1566_v4  ;;  %v362_v52 = vld [vmem:[#allocation2 + $0x28] sm:$0xff] }
  0x84   : > { %1318 = vmatprep.subr.bf16.mxu0 %v1567_v5  ;;  %1412 = vmatprep.subr.bf16.mxu1 %v1567_v5  ;;  %v352_v57 = vld [vmem:[#allocation2 + $0x68] sm:$0xff] }
  0x87   : > { %1319 = vmatpush3.bf16.msra.mxu0 %v1567_v5  ;;  %1420 = vmatpush3.bf16.msra.mxu1 %v1567_v5 }
  0x88   : > { %1320 = vmatprep.subr.bf16.mxu0 %v1568_v6  ;;  %1413 = vmatprep.subr.bf16.mxu1 %v1568_v6 }
  0x8b   : > { %1321 = vmatpush3.bf16.msra.mxu0 %v1568_v6  ;;  %1421 = vmatpush3.bf16.msra.mxu1 %v1568_v6 }
  0x8c   : > { %1322 = vmatprep.subr.bf16.mxu0 %v1569_v7  ;;  %1414 = vmatprep.subr.bf16.mxu1 %v1569_v7 }
  0x8f   : > { %1323 = vmatpush3.bf16.msra.mxu0 %v1569_v7  ;;  %1422 = vmatpush3.bf16.msra.mxu1 %v1569_v7 }
  0x90   : > { %1324 = vmatprep.subr.bf16.mxu0 %v1570_v8  ;;  %1415 = vmatprep.subr.bf16.mxu1 %v1570_v8 }
  0x93   : > { %1325 = vmatpush3.bf16.msra.mxu0 %v1570_v8  ;;  %1423 = vmatpush3.bf16.msra.mxu1 %v1570_v8 }
  0x94   : > { %1326 = vmatprep.subr.bf16.mxu0 %v1571_v9  ;;  %1416 = vmatprep.subr.bf16.mxu1 %v1571_v9 }
  0x97   : > { %1327 = vmatpush3.bf16.msra.mxu0 %v1571_v9  ;;  %1424 = vmatpush3.bf16.msra.mxu1 %v1571_v9 }
  0x98   : > { %1328 = vmatprep.subr.bf16.mxu0 %v1572_v10  ;;  %1417 = vmatprep.subr.bf16.mxu1 %v1572_v10 }
  0x9b   : > { %1329 = vmatpush3.bf16.msra.mxu0 %v1572_v10  ;;  %1425 = vmatpush3.bf16.msra.mxu1 %v1572_v10 }
  0x9e   : > { %1331 = vmatmul.mubr.bf16.vlgmr.msra.gmra.mxu0 %v1575_v11  ;;  %1339 = vmatmul.mubr.bf16.vlgmr.msra.gmra.mxu1 %v1576_v12 }
  0x9f   : > { %1334 = vmatprep.mubr.bf16.mxu0 %v1577_v13  ;;  %1342 = vmatprep.mubr.bf16.mxu1 %v1578_v14 }
  0xa6   : > { %1335 = vmatmul.mubr.bf16.gmra.mxu0 %v1579_v15  ;;  %1343 = vmatmul.mubr.bf16.gmra.mxu1 %v1580_v16 }
 0x15e   : > { %v1332_v19 = vpop.f32.mrf.mxu0  ;;  %v1340_v20 = vpop.f32.mrf.mxu1 }
 0x15f   : > { %v574_v23 = vadd.f32 %v1332_v19, %v349_v17  ;;  %v582_v24 = vadd.f32 %v1340_v20, %v357_v18 }
 0x160   : > { %v509_v25 = vpop.f32.mrf.mxu0  ;;  %v541_v26 = vpop.f32.mrf.mxu1 }
 0x161   : > { %590 = vst [vmem:[#allocation2 + $0x58] sm:$0xff] %v574_v23  ;;  %598 = vst [vmem:[#allocation2 + $0x10] sm:$0xff] %v582_v24  ;;  %v572_v29 = vadd.f32 %v509_v25, %v347_v21  ;;  %v580_v30 = vadd.f32 %v541_v26, %v355_v22 }
 0x162   : > { %v1333_v31 = vpop.f32.mrf.mxu0  ;;  %v1341_v32 = vpop.f32.mrf.mxu1 }
 0x163   : > { %588 = vst [vmem:[#allocation2 + $0x30] sm:$0xff] %v572_v29  ;;  %596 = vst [vmem:[#allocation2 + $0x40] sm:$0xff] %v580_v30  ;;  %v575_v35 = vadd.f32 %v1333_v31, %v350_v27  ;;  %v583_v36 = vadd.f32 %v1341_v32, %v358_v28 }
 0x164   : > { %v512_v37 = vpop.f32.mrf.mxu0  ;;  %v544_v38 = vpop.f32.mrf.mxu1 }
 0x165   : > { %591 = vst [vmem:[#allocation2 + $0x18] sm:$0xff] %v575_v35  ;;  %599 = vst [vmem:[#allocation2 + $0x38] sm:$0xff] %v583_v36  ;;  %v573_v41 = vadd.f32 %v512_v37, %v348_v33  ;;  %v581_v42 = vadd.f32 %v544_v38, %v356_v34 }
 0x166   : > { %v1336_v43 = vpop.f32.mrf.mxu0  ;;  %v1344_v44 = vpop.f32.mrf.mxu1 }
 0x167   : > { %589 = vst [vmem:[#allocation2] sm:$0xff] %v573_v41  ;;  %597 = vst [vmem:[#allocation2 + $0x20] sm:$0xff] %v581_v42  ;;  %v578_v47 = vadd.f32 %v1336_v43, %v353_v39  ;;  %v586_v48 = vadd.f32 %v1344_v44, %v361_v40 }
 0x168   : > { %v525_v49 = vpop.f32.mrf.mxu0  ;;  %v557_v50 = vpop.f32.mrf.mxu1 }
 0x169   : > { %594 = vst [vmem:[#allocation2 + $0x8] sm:$0xff] %v578_v47  ;;  %602 = vst [vmem:[#allocation2 + $0x78] sm:$0xff] %v586_v48  ;;  %v576_v53 = vadd.f32 %v525_v49, %v351_v45  ;;  %v584_v54 = vadd.f32 %v557_v50, %v359_v46 }
 0x16a   : > { %v1337_v55 = vpop.f32.mrf.mxu0  ;;  %v1345_v56 = vpop.f32.mrf.mxu1 }
 0x16b   : > { %592 = vst [vmem:[#allocation2 + $0x50] sm:$0xff] %v576_v53  ;;  %600 = vst [vmem:[#allocation2 + $0x60] sm:$0xff] %v584_v54  ;;  %v579_v59 = vadd.f32 %v1337_v55, %v354_v51  ;;  %v587_v60 = vadd.f32 %v1345_v56, %v362_v52  ;;  %607 = sbr.rel (%p1231_p0) target bundleno = 629 (0x275), region = 64 }
 0x16c   : > { %v528_v61 = vpop.f32.mrf.mxu0  ;;  %v560_v62 = vpop.f32.mrf.mxu1 }
 0x16d   : > { %595 = vst [vmem:[#allocation2 + $0x48] sm:$0xff] %v579_v59  ;;  %603 = vst [vmem:[#allocation2 + $0x28] sm:$0xff] %v587_v60  ;;  %v577_v63 = vadd.f32 %v528_v61, %v352_v57  ;;  %v585_v0 = vadd.f32 %v560_v62, %v360_v58 }
 0x16f   : > { %593 = vst [vmem:[#allocation2 + $0x68] sm:$0xff] %v577_v63  ;;  %601 = vst [vmem:[#allocation2 + $0x70] sm:$0xff] %v585_v0 }
 0x170   : > { %v1581_v1 = vld [vmem:[#allocation8 + $0x38] sm:$0xff]   ;;  %v1583_v3 = vld [vmem:[#allocation8 + $0x30] sm:$0xff]   ;;  %v1585_v5 = vld [vmem:[#allocation8 + $0x28] sm:$0xff]  }
 0x171   : > { %v1582_v2 = vld [vmem:[#allocation9 + $0x38] sm:$0xff]   ;;  %1346 = vmatprep.subr.bf16.mxu0 %v1581_v1  ;;  %v1584_v4 = vld [vmem:[#allocation9 + $0x30] sm:$0xff]   ;;  %v1586_v6 = vld [vmem:[#allocation9 + $0x28] sm:$0xff]  }
 0x172   : > { %1378 = vmatprep.subr.bf16.mxu1 %v1582_v2  ;;  %1347 = vmatpush3.bf16.msra.mxu0 %v1581_v1  ;;  %v1587_v7 = vld [vmem:[#allocation8 + $0x20] sm:$0xff]   ;;  %v1589_v9 = vld [vmem:[#allocation8 + $0x18] sm:$0xff]   ;;  %v1591_v11 = vld [vmem:[#allocation8 + $0x10] sm:$0xff]  }
 0x173   : > { %1379 = vmatpush3.bf16.msra.mxu1 %v1582_v2  ;;  %1348 = vmatprep.subr.bf16.mxu0 %v1583_v3  ;;  %v1588_v8 = vld [vmem:[#allocation9 + $0x20] sm:$0xff]   ;;  %v1590_v10 = vld [vmem:[#allocation9 + $0x18] sm:$0xff]   ;;  %v629_v12 = vld [vmem:[#allocation2 + $0x30] sm:$0xff] }
 0x174   : > { %1380 = vmatprep.subr.bf16.mxu1 %v1584_v4  ;;  %v630_v13 = vld [vmem:[#allocation2] sm:$0xff]  ;;  %v1592_v14 = vld [vmem:[#allocation9 + $0x10] sm:$0xff]   ;;  %v1593_v17 = vld [vmem:[#allocation8 + $0x8] sm:$0xff]  }
 0x175   : > { %v645_v15 = vpack.c.bf16 %v630_v13, %v629_v12  ;;  %v1597_v16 = vld [vmem:[%s2102_s15] sm:$0xff]   ;;  %v1594_v18 = vld [vmem:[#allocation9 + $0x8] sm:$0xff]   ;;  %v631_v21 = vld [vmem:[#allocation2 + $0x58] sm:$0xff] }
 0x176   : > { %1349 = vmatpush3.bf16.msra.mxu0 %v1583_v3  ;;  %1394 = vmatprep.mubr.bf16.mxu1 %v1597_v16  ;;  %v1595_v19 = vld [vmem:[#allocation8] sm:$0xff]   ;;  %v632_v22 = vld [vmem:[#allocation2 + $0x18] sm:$0xff]  ;;  %v633_v23 = vld [vmem:[#allocation2 + $0x50] sm:$0xff] }
 0x177   : > { %1381 = vmatpush3.bf16.msra.mxu1 %v1584_v4  ;;  %1350 = vmatprep.subr.bf16.mxu0 %v1585_v5  ;;  %v1596_v20 = vld [vmem:[#allocation9] sm:$0xff]   ;;  %v634_v24 = vld [vmem:[#allocation2 + $0x68] sm:$0xff]  ;;  %v646_v25 = vpack.c.bf16 %v632_v22, %v631_v21  ;;  %v1599_v28 = vld [vmem:[%s2102_s15 + $0x10] sm:$0xff]  }
 0x178   : > { %1382 = vmatprep.subr.bf16.mxu1 %v1586_v6  ;;  %1362 = vmatprep.mubr.bf16.mxu0 %v645_v15  ;;  %v1598_v26 = vld [vmem:[%s2102_s15 + $0x8] sm:$0xff]   ;;  %v647_v27 = vpack.c.bf16 %v634_v24, %v633_v23  ;;  %v637_v31 = vld [vmem:[#allocation2 + $0x40] sm:$0xff]  ;;  %v1600_v34 = vld [vmem:[%s2102_s15 + $0x18] sm:$0xff]  }
 0x179   : > { %v635_v29 = vld [vmem:[#allocation2 + $0x8] sm:$0xff]  ;;  %v638_v32 = vld [vmem:[#allocation2 + $0x20] sm:$0xff]  ;;  %v639_v37 = vld [vmem:[#allocation2 + $0x10] sm:$0xff] }
 0x17a   : > { %1351 = vmatpush3.bf16.msra.mxu0 %v1585_v5  ;;  %v636_v30 = vld [vmem:[#allocation2 + $0x48] sm:$0xff]  ;;  %v649_v35 = vpack.c.bf16 %v638_v32, %v637_v31  ;;  %v1601_v36 = vld [vmem:[%s2102_s15 + $0x20] sm:$0xff]   ;;  %v640_v38 = vld [vmem:[#allocation2 + $0x38] sm:$0xff] }
 0x17b   : > { %1383 = vmatpush3.bf16.msra.mxu1 %v1586_v6  ;;  %1352 = vmatprep.subr.bf16.mxu0 %v1587_v7  ;;  %v648_v33 = vpack.c.bf16 %v636_v30, %v635_v29  ;;  %v641_v39 = vld [vmem:[#allocation2 + $0x60] sm:$0xff]  ;;  %v642_v40 = vld [vmem:[#allocation2 + $0x70] sm:$0xff]  ;;  %v650_v41 = vpack.c.bf16 %v640_v38, %v639_v37  ;;  %v1602_v42 = vld [vmem:[%s2102_s15 + $0x28] sm:$0xff]  }
 0x17c   : > { %1384 = vmatprep.subr.bf16.mxu1 %v1588_v8  ;;  %v651_v43 = vpack.c.bf16 %v642_v40, %v641_v39  ;;  %v1603_v44 = vld [vmem:[%s2102_s15 + $0x30] sm:$0xff]   ;;  %v643_v45 = vld [vmem:[#allocation2 + $0x78] sm:$0xff]  ;;  %v644_v46 = vld [vmem:[#allocation2 + $0x28] sm:$0xff] }
 0x17d   : > { %v652_v47 = vpack.c.bf16 %v644_v46, %v643_v45  ;;  %v1604_v48 = vld [vmem:[%s2102_s15 + $0x38] sm:$0xff]   ;;  %v2115_v49 = vld [vmem:[%s2224_s4] ss:$0 sm:$0xff] }
 0x17e   : > { %1353 = vmatpush3.bf16.msra.mxu0 %v1587_v7 }
 0x17f   : > { %1385 = vmatpush3.bf16.msra.mxu1 %v1588_v8  ;;  %1354 = vmatprep.subr.bf16.mxu0 %v1589_v9 }
 0x180   : > { %1386 = vmatprep.subr.bf16.mxu1 %v1590_v10 }
 0x182   : > { %1355 = vmatpush3.bf16.msra.mxu0 %v1589_v9 }
 0x183   : > { %1387 = vmatpush3.bf16.msra.mxu1 %v1590_v10  ;;  %1356 = vmatprep.subr.bf16.mxu0 %v1591_v11 }
 0x184   : > { %1388 = vmatprep.subr.bf16.mxu1 %v1592_v14 }
 0x186   : > { %1357 = vmatpush3.bf16.msra.mxu0 %v1591_v11 }
 0x187   : > { %1389 = vmatpush3.bf16.msra.mxu1 %v1592_v14  ;;  %1358 = vmatprep.subr.bf16.mxu0 %v1593_v17 }
 0x188   : > { %1390 = vmatprep.subr.bf16.mxu1 %v1594_v18 }
 0x18a   : > { %1359 = vmatpush3.bf16.msra.mxu0 %v1593_v17 }
 0x18b   : > { %1391 = vmatpush3.bf16.msra.mxu1 %v1594_v18  ;;  %1360 = vmatprep.subr.bf16.mxu0 %v1595_v19 }
 0x18c   : > { %1392 = vmatprep.subr.bf16.mxu1 %v1596_v20 }
 0x18e   : > { %1361 = vmatpush3.bf16.msra.mxu0 %v1595_v19 }
 0x18f   : > { %1393 = vmatpush3.bf16.msra.mxu1 %v1596_v20 }
 0x191   : > { %1363 = vmatmul.mubr.bf16.vlgmr.msra.gmra.mxu0 %v646_v25 }
 0x192   : > { %1395 = vmatmul.mubr.bf16.vlgmr.msra.gmra.mxu1 %v1598_v26  ;;  %1366 = vmatprep.mubr.bf16.mxu0 %v647_v27 }
 0x193   : > { %1398 = vmatprep.mubr.bf16.mxu1 %v1599_v28 }
 0x199   : > { %1367 = vmatmul.mubr.bf16.gmra.mxu0 %v648_v33 }
 0x19a   : > { %1399 = vmatmul.mubr.bf16.gmra.mxu1 %v1600_v34  ;;  %1370 = vmatprep.mubr.bf16.mxu0 %v649_v35 }
 0x19b   : > { %1402 = vmatprep.mubr.bf16.mxu1 %v1601_v36 }
 0x1a1   : > { %1371 = vmatmul.mubr.bf16.gmra.mxu0 %v650_v41 }
 0x1a2   : > { %1403 = vmatmul.mubr.bf16.gmra.mxu1 %v1602_v42  ;;  %1374 = vmatprep.mubr.bf16.mxu0 %v651_v43 }
 0x1a3   : > { %1406 = vmatprep.mubr.bf16.mxu1 %v1603_v44 }
 0x1a9   : > { %1375 = vmatmul.mubr.bf16.gmra.mxu0 %v652_v47 }
 0x1aa   : > { %1407 = vmatmul.mubr.bf16.gmra.mxu1 %v1604_v48 }
 0x251   : > { %v1364_v50 = vpop.f32.mrf.mxu0 }
 0x252   : > { %v767_v51 = vadd.f32 %v1364_v50, %v2115_v49  ;;  %v1396_v52 = vpop.f32.mrf.mxu1 }
 0x253   : > { %v758_v53 = vpop.f32.mrf.mxu0 }
 0x254   : > { %v1032_v54 = vadd.f32 %v1396_v52, %v767_v51  ;;  %v759_v55 = vadd.f32 %v2115_v49, %v758_v53  ;;  %v967_v56 = vpop.f32.mrf.mxu1 }
 0x255   : > { %v1365_v57 = vpop.f32.mrf.mxu0 }
 0x256   : > { %1048 = vst [vmem:[%s2078_s17 + $0x10] sm:$0xff] %v1032_v54  ;;  %v1030_v58 = vadd.f32 %v967_v56, %v759_v55  ;;  %v770_v59 = vadd.f32 %v1365_v57, %v2115_v49  ;;  %v1397_v60 = vpop.f32.mrf.mxu1 }
 0x257   : > { %v761_v61 = vpop.f32.mrf.mxu0 }
 0x258   : > { %1046 = vst [vmem:[%s2078_s17] sm:$0xff] %v1030_v58  ;;  %v1033_v62 = vadd.f32 %v1397_v60, %v770_v59  ;;  %v762_v63 = vadd.f32 %v2115_v49, %v761_v61  ;;  %v970_v0 = vpop.f32.mrf.mxu1 }
 0x259   : > { %v1368_v1 = vpop.f32.mrf.mxu0 }
 0x25a   : > { %1049 = vst [vmem:[%s2078_s17 + $0x18] sm:$0xff] %v1033_v62  ;;  %v1031_v2 = vadd.f32 %v970_v0, %v762_v63  ;;  %v783_v3 = vadd.f32 %v1368_v1, %v2115_v49  ;;  %v1400_v4 = vpop.f32.mrf.mxu1 }
 0x25b   : > { %v774_v5 = vpop.f32.mrf.mxu0 }
 0x25c   : > { %1047 = vst [vmem:[%s2078_s17 + $0x8] sm:$0xff] %v1031_v2  ;;  %v1036_v6 = vadd.f32 %v1400_v4, %v783_v3  ;;  %v775_v7 = vadd.f32 %v2115_v49, %v774_v5  ;;  %v983_v8 = vpop.f32.mrf.mxu1 }
 0x25d   : > { %v1369_v9 = vpop.f32.mrf.mxu0 }
 0x25e   : > { %1052 = vst [vmem:[%s2078_s17 + $0x30] sm:$0xff] %v1036_v6  ;;  %v1034_v10 = vadd.f32 %v983_v8, %v775_v7  ;;  %v786_v11 = vadd.f32 %v1369_v9, %v2115_v49  ;;  %v1401_v12 = vpop.f32.mrf.mxu1 }
 0x25f   : > { %v777_v13 = vpop.f32.mrf.mxu0 }
 0x260   : > { %1050 = vst [vmem:[%s2078_s17 + $0x20] sm:$0xff] %v1034_v10  ;;  %v1037_v14 = vadd.f32 %v1401_v12, %v786_v11  ;;  %v778_v15 = vadd.f32 %v2115_v49, %v777_v13  ;;  %v986_v16 = vpop.f32.mrf.mxu1 }
 0x261   : > { %v1372_v17 = vpop.f32.mrf.mxu0 }
 0x262   : > { %1053 = vst [vmem:[%s2078_s17 + $0x38] sm:$0xff] %v1037_v14  ;;  %v1035_v18 = vadd.f32 %v986_v16, %v778_v15  ;;  %v799_v19 = vadd.f32 %v1372_v17, %v2115_v49  ;;  %v1404_v20 = vpop.f32.mrf.mxu1 }
 0x263   : > { %v790_v21 = vpop.f32.mrf.mxu0 }
 0x264   : > { %1051 = vst [vmem:[%s2078_s17 + $0x28] sm:$0xff] %v1035_v18  ;;  %v1040_v22 = vadd.f32 %v1404_v20, %v799_v19  ;;  %v791_v23 = vadd.f32 %v2115_v49, %v790_v21  ;;  %v999_v24 = vpop.f32.mrf.mxu1 }
 0x265   : > { %v1373_v25 = vpop.f32.mrf.mxu0 }
 0x266   : > { %1056 = vst [vmem:[%s2078_s17 + $0x50] sm:$0xff] %v1040_v22  ;;  %v1038_v26 = vadd.f32 %v999_v24, %v791_v23  ;;  %v802_v27 = vadd.f32 %v1373_v25, %v2115_v49  ;;  %v1405_v28 = vpop.f32.mrf.mxu1 }
 0x267   : > { %v793_v29 = vpop.f32.mrf.mxu0 }
 0x268   : > { %1054 = vst [vmem:[%s2078_s17 + $0x40] sm:$0xff] %v1038_v26  ;;  %v1041_v30 = vadd.f32 %v1405_v28, %v802_v27  ;;  %v794_v31 = vadd.f32 %v2115_v49, %v793_v29  ;;  %v1002_v32 = vpop.f32.mrf.mxu1 }
 0x269   : > { %v1376_v33 = vpop.f32.mrf.mxu0 }
 0x26a   : > { %1057 = vst [vmem:[%s2078_s17 + $0x58] sm:$0xff] %v1041_v30  ;;  %v1039_v34 = vadd.f32 %v1002_v32, %v794_v31  ;;  %v815_v35 = vadd.f32 %v1376_v33, %v2115_v49  ;;  %v1408_v36 = vpop.f32.mrf.mxu1 }
 0x26b   : > { %v806_v37 = vpop.f32.mrf.mxu0 }
 0x26c   : > { %1055 = vst [vmem:[%s2078_s17 + $0x48] sm:$0xff] %v1039_v34  ;;  %v1044_v38 = vadd.f32 %v1408_v36, %v815_v35  ;;  %v807_v39 = vadd.f32 %v2115_v49, %v806_v37  ;;  %v1015_v40 = vpop.f32.mrf.mxu1 }
 0x26d   : > { %v1377_v41 = vpop.f32.mrf.mxu0 }
 0x26e   : > { %1060 = vst [vmem:[%s2078_s17 + $0x70] sm:$0xff] %v1044_v38  ;;  %v1042_v42 = vadd.f32 %v1015_v40, %v807_v39  ;;  %v818_v43 = vadd.f32 %v1377_v41, %v2115_v49  ;;  %v1409_v44 = vpop.f32.mrf.mxu1 }
 0x26f   : > { %v809_v45 = vpop.f32.mrf.mxu0 }
 0x270   : > { %1058 = vst [vmem:[%s2078_s17 + $0x60] sm:$0xff] %v1042_v42  ;;  %v1045_v46 = vadd.f32 %v1409_v44, %v818_v43  ;;  %v810_v47 = vadd.f32 %v2115_v49, %v809_v45  ;;  %v1018_v48 = vpop.f32.mrf.mxu1 }
 0x272   : > { %1061 = vst [vmem:[%s2078_s17 + $0x78] sm:$0xff] %v1045_v46  ;;  %v1043_v50 = vadd.f32 %v1018_v48, %v810_v47 }
 0x274   : > { %1059 = vst [vmem:[%s2078_s17 + $0x68] sm:$0xff] %v1043_v50 }
 0x275 PF: > { %s2266_s1 = sld [smem:[#allocation18_spill]]  ;;  %s1265_s3 = sshll.u32 %s1827_s25, 11 }
 0x276   : > { %s2267_s14 = sld [smem:[#allocation25_spill]]  ;;  %s1076_s6 = sshll.u32 %s2078_s17, 4  ;;  %s2156_s6 = int_to_ptr.vmem [resolvable:$true] %s1076_s6 }
 0x277   : > { %s2160_s13 = scalar_lea.sflag [#allocation5], %s300_s18  ;;  %s1711_s7 = scalar_lea.vmem %s2156_s6, 2048 }
 0x278   : > { %p1712_p7 = scmp.ne.s32.totalorder %s2156_s6, %s1711_s7  ;;  %s1849_s25 = smov [#allocation11]  }
 0x279   : > { %s1715_s10 = sshll.u32 %s1849_s25, 4  ;;  %s1716_s10 = int_to_ptr.vmem [resolvable:$false] %s1715_s10 }
 0x27a   : > { %s1717_s9 = scalar_lea.vmem %s1716_s10, 4096  ;;  %p1718_p1 = scmp.lt.s32.totalorder %s2156_s6, %s1716_s10 }
 0x27b   : > { %p2268_p5 = scmp.ne.s32.totalorder %s2266_s1, 0  ;;  %p1719_p4 = scmp.lt.s32.totalorder %s1717_s9, %s1711_s7 }
 0x27c   : > { %s2153_s29 = scalar_lea.hbm %s2267_s14, %s1265_s3 }
 0x27d   : > { %p1713_p11 = pnand %p1712_p7, %p2268_p5  ;;  %p1720_p2 = por %p1719_p4, %p1718_p1 }
 0x27f   : > { %p1714_p13 = pneg %p1713_p11 }
 0x281   : > { %p1721_p12 = pnand %p1720_p2, %p1714_p13 }
 0x283   : > { %1724 = shalt.err (!%p1721_p12)
}
 0x284   : > { %s1725_s18 = scalar_lea.hbm %s2153_s29, 2048  ;;  %s1729_s21 = scalar_lea.hbm %s2267_s14, 4096 }
 0x285   : > { %p1726_p10 = scmp.ne.s32.totalorder %s2153_s29, %s1725_s18  ;;  %p1730_p9 = scmp.lt.s32.totalorder %s2153_s29, %s2267_s14 }
 0x286   : > { %p1731_p6 = scmp.lt.s32.totalorder %s1729_s21, %s1725_s18 }
 0x287   : > { %p1727_p3 = pnand %p1726_p10, %p2268_p5 }
 0x288   : > { %p1732_p0 = por %p1731_p6, %p1730_p9 }
 0x289   : > { %p1728_p8 = pneg %p1727_p3 }
 0x28b   : > { %p1733_p7 = pnand %p1732_p0, %p1728_p8 }
 0x28d   : > { %1736 = shalt.err (!%p1733_p7)
}
 0x28e   : > { %s1850_s15 = smov 128   ;;  %s1851_s12 = smov 8  }
 0x28f   : > { %1440 = dma.vmem_to_hbm [thread:$0]  (%p2268_p5), %s2156_s6, 2048, %s2153_s29, %s2160_s13, %s1850_s15, %s1850_s15, %s1851_s12  }
 0x290 PF: > { %s2269_s2 = sld [smem:[#allocation17_spill]] }
 0x291   : > { %s2270_s3 = sld [smem:[#allocation16_spill]] }
 0x292   : > { %s2271_s28 = sld [smem:[#allocation19_spill]] }
 0x296   : > { %p1467_p11 = scmp.ge.s32.totalorder %s2269_s2, 2 }
 0x297   : > { %s1091_s11 = sand.u32 1, %s2270_s3  }
 0x298   : > { %p2272_p13 = scmp.ne.s32.totalorder %s2271_s28, 0  ;;  %s1092_s7 = scalar_lea.sflag [#allocation5], %s1091_s11 }
 0x29a   : > { %p1457_p1 = pnand %p1467_p11, %p2272_p13 }
 0x29c   : > { %p1458_p4 = pneg %p1457_p1 }
 0x29e   : > { %1794 = dma.done.wait (%p1458_p4), %s1092_s7, 2048  }
 0x29f   : > { %1796 = vsyncadd (%p1458_p4), %s1092_s7, 4294965248  ;;  %s23_s28 = sadd.s32 1, %s2269_s2   ;;  %s2273_s1 = sld [smem:[#allocation20_spill]] }
 0x2a0   : > { %p20_p2 = scmp.ge.s32.totalorder %s23_s28, 6   ;;  %s2274_s29 = sld [smem:[#allocation21_spill]] }
 0x2a1   : > { %s2275_s18 = smov %s1803_s19  ;;  %s2276_s19 = smov %s1807_s20 }
 0x2a2   : > { %s2277_s20 = smov %s2045_s5  ;;  %s2278_s21 = smov %s1815_s22 }
 0x2a3   : > { %s2279_s22 = smov %s1819_s23  ;;  %s2280_s23 = smov %s2050_s8 }
 0x2a4   : > { %s2281_s24 = smov %s1831_s26  ;;  %s2282_s25 = smov %s1835_s27 }
 0x2a5   : > { %s2283_s26 = smov %s2273_s1  ;;  %22 = sbr.rel (!%p20_p2) target bundleno = 16 (0x10), region = 107 }
 0x2a6   : > { %s2284_s27 = smov %s2274_s29 }
 0x2aa   :  { %1097 = vsyncpa [#allocation4], 1 }
 0x2ab   :  { %1099 = vsyncpa [#allocation4 + $0x1], 1 }
 0x2ac   :  { %1100 = vsyncpa [#allocation7], 1 }
 0x2ad   :  { %1101 = vsyncpa [#allocation10], 1 }
 0x2ae   :  { %1102 = vsyncpa [#allocation5], 1 }
 0x2af   :  { %1104 = vsyncpa [#allocation5 + $0x1], 1 }

</bundles_post_ra>
